<compile_context>
chip_gen: v7x
topology: tpu7x:2x2x1
jax: 0.10.0
libtpu: 0.0.40
codegen_flags: <defaults>
</compile_context>

<pallas_src>
import jax
import jax.numpy as jnp
from jax import lax
from jax.experimental import pallas as pl
from jax.experimental.pallas import tpu as pltpu

EMB_SIZE = 64
HIDDEN_SIZE = 256            # nn.Linear(emb*4, hidden*2) -> hidden*2 = 512
OUTPUT_SIZE = 256
D_IN = EMB_SIZE * 4          # 256
D_HID = HIDDEN_SIZE * 2      # 512
D_OUT = OUTPUT_SIZE          # 256


def _fused_kernel(idx_ref, g_ref, k_ref, m_ref, u_ref,
                  w1_ref, b1_ref, w2_ref, b2_ref, out_ref):
    # idx_ref: (tile_n, 4) int32          tables: (vocab_pad_j, 64) bf16
    # w1_ref: (256, 512) bf16   b1_ref: (1, 512) f32
    # w2_ref: (512, 256) bf16   b2_ref: (1, 256) f32
    # out_ref: (tile_n, 256) f32
    idx = idx_ref[...]
    tile_n = out_ref.shape[0]

    h = b1_ref[...]                                    # (1, 512) f32, broadcasts
    for j, tbl_ref in enumerate((g_ref, k_ref, m_ref, u_ref)):
        vp = tbl_ref.shape[0]
        # One-hot gather of this field's embedding rows (exact row selection).
        onehot = (idx[:, j:j + 1] ==
                  lax.broadcasted_iota(jnp.int32, (tile_n, vp), 1)
                  ).astype(jnp.bfloat16)               # (tile_n, vp)
        emb_j = jnp.dot(onehot, tbl_ref[...],
                        preferred_element_type=jnp.float32)     # (tile_n, 64)
        # concat + first Linear fused: x @ W1 == sum_j emb_j @ W1[64j:64(j+1)]
        h = h + jnp.dot(emb_j.astype(jnp.bfloat16),
                        w1_ref[j * EMB_SIZE:(j + 1) * EMB_SIZE, :],
                        preferred_element_type=jnp.float32)     # (tile_n, 512)
    h = jnp.maximum(h, 0.0)                                      # ReLU, f32
    y = jnp.dot(h.astype(jnp.bfloat16), w2_ref[...],
                preferred_element_type=jnp.float32) + b2_ref[...]
    out_ref[...] = y.astype(out_ref.dtype)


def init_params(vocab_sizes, key):
    """Deterministic parameter init matching the module's shapes."""
    ks = jax.random.split(key, 8)
    params = {
        "genre_emb": jax.random.normal(ks[0], (vocab_sizes[0], EMB_SIZE), jnp.float32) * 0.02,
        "key_emb":   jax.random.normal(ks[1], (vocab_sizes[1], EMB_SIZE), jnp.float32) * 0.02,
        "meter_emb": jax.random.normal(ks[2], (vocab_sizes[2], EMB_SIZE), jnp.float32) * 0.02,
        "unl_emb":   jax.random.normal(ks[3], (vocab_sizes[3], EMB_SIZE), jnp.float32) * 0.02,
        # stored as (in, out) = PyTorch weight.T
        "w1": jax.random.normal(ks[4], (D_IN, D_HID), jnp.float32) * (1.0 / jnp.sqrt(D_IN)),
        "b1": jax.random.normal(ks[5], (1, D_HID), jnp.float32) * 0.01,
        "w2": jax.random.normal(ks[6], (D_HID, D_OUT), jnp.float32) * (1.0 / jnp.sqrt(D_HID)),
        "b2": jax.random.normal(ks[7], (1, D_OUT), jnp.float32) * 0.01,
    }
    return params


def _pad_table_bf16(t):
    v = t.shape[0]
    vp = ((v + 7) // 8) * 8
    return jnp.pad(t, ((0, vp - v), (0, 0))).astype(jnp.bfloat16)


def header_emb_forward(input_tensor, params, *, tile_n=256):
    """Fused gather + MLP forward. input_tensor: (N, 4) integer indices."""
    n = input_tensor.shape[0]

    # Batch tile: multiple of 8, no larger than the (8-rounded) batch.
    n_pad8 = max(8, ((n + 7) // 8) * 8)
    tile = max(8, (min(tile_n, n_pad8) // 8) * 8)
    n_pad = ((n + tile - 1) // tile) * tile

    idx = jnp.pad(input_tensor.astype(jnp.int32), ((0, n_pad - n), (0, 0)))

    g = _pad_table_bf16(params["genre_emb"])
    k = _pad_table_bf16(params["key_emb"])
    m = _pad_table_bf16(params["meter_emb"])
    u = _pad_table_bf16(params["unl_emb"])
    w1 = params["w1"].astype(jnp.bfloat16)
    w2 = params["w2"].astype(jnp.bfloat16)
    b1 = params["b1"]
    b2 = params["b2"]

    out = pl.pallas_call(
        _fused_kernel,
        out_shape=jax.ShapeDtypeStruct((n_pad, D_OUT), jnp.float32),
        grid_spec=pltpu.PrefetchScalarGridSpec(
            num_scalar_prefetch=0,
            grid=(n_pad // tile,),
            in_specs=[
                pl.BlockSpec((tile, 4),      lambda i: (i, 0)),   # indices (tiled)
                pl.BlockSpec(g.shape,        lambda i: (0, 0)),   # tables (resident)
                pl.BlockSpec(k.shape,        lambda i: (0, 0)),
                pl.BlockSpec(m.shape,        lambda i: (0, 0)),
                pl.BlockSpec(u.shape,        lambda i: (0, 0)),
                pl.BlockSpec((D_IN, D_HID),  lambda i: (0, 0)),   # W1
                pl.BlockSpec((1, D_HID),     lambda i: (0, 0)),   # b1
                pl.BlockSpec((D_HID, D_OUT), lambda i: (0, 0)),   # W2
                pl.BlockSpec((1, D_OUT),     lambda i: (0, 0)),   # b2
            ],
            out_specs=pl.BlockSpec((tile, D_OUT), lambda i: (i, 0)),
        ),
        compiler_params=pltpu.CompilerParams(
            dimension_semantics=("parallel",)),
    )(idx, g, k, m, u, w1, b1, w2, b2)
    return out[:n]


def reference_forward(input_tensor, params):
    """Pure-JAX f32 reference mirroring the PyTorch module."""
    genre = jnp.take(params["genre_emb"], input_tensor[:, 0], axis=0)
    keyv  = jnp.take(params["key_emb"],   input_tensor[:, 1], axis=0)
    meter = jnp.take(params["meter_emb"], input_tensor[:, 2], axis=0)
    unl   = jnp.take(params["unl_emb"],   input_tensor[:, 3], axis=0)
    emb = jnp.concatenate([genre, keyv, meter, unl], axis=1)     # (N, 256)
    h = jnp.maximum(emb @ params["w1"] + params["b1"], 0.0)
    return h @ params["w2"] + params["b2"]


def _make_inputs(k_idx, n, vocab_sizes):
    cols = []
    for j, vs in enumerate(vocab_sizes):
        cols.append(jax.random.randint(jax.random.fold_in(k_idx, j), (n, 1), 0, vs))
    return jnp.concatenate(cols, axis=1).astype(jnp.int32)


if __name__ == "__main__":
    key = jax.random.PRNGKey(0)
    k_param, k_idx = jax.random.split(key)

    # vocab = (genre_vocab, key_vocab, meter_vocab, unit_note_length_vocab)
    vocab_sizes = (10, 12, 8, 6)
    params = init_params(vocab_sizes, k_param)

    # Case 1: tiny batch (module's N x 4 LongTensor) -> single grid step.
    N = 8
    inp_small = _make_inputs(k_idx, N, vocab_sizes)               # (8, 4)
    out = jax.block_until_ready(header_emb_forward(inp_small, params))
    ref = reference_forward(inp_small, params)
    assert out.shape == (N, OUTPUT_SIZE), out.shape
    assert jnp.allclose(out, ref, atol=2e-3, rtol=2e-2), "mismatch (small batch)"

    # Case 2: multi-tile batch with a remainder -> exercises tiling/padding path.
    N2 = 300
    inp_big = _make_inputs(jax.random.fold_in(k_idx, 99), N2, vocab_sizes)
    out2 = jax.block_until_ready(header_emb_forward(inp_big, params))
    ref2 = reference_forward(inp_big, params)
    assert out2.shape == (N2, OUTPUT_SIZE), out2.shape
    assert jnp.allclose(out2, ref2, atol=2e-3, rtol=2e-2), "mismatch (large batch)"

    print("KERNEL_OK")
</pallas_src>

<mosaic_0001>
module attributes {stable_mosaic.version = 11 : i64} {
  func.func @_fused_kernel(%arg0: i32, %arg1: memref<8x4xi32, #tpu.memory_space<vmem>>, %arg2: memref<16x64xbf16, #tpu.memory_space<vmem>>, %arg3: memref<16x64xbf16, #tpu.memory_space<vmem>>, %arg4: memref<8x64xbf16, #tpu.memory_space<vmem>>, %arg5: memref<8x64xbf16, #tpu.memory_space<vmem>>, %arg6: memref<256x512xbf16, #tpu.memory_space<vmem>>, %arg7: memref<1x512xf32, #tpu.memory_space<vmem>>, %arg8: memref<512x256xbf16, #tpu.memory_space<vmem>>, %arg9: memref<1x256xf32, #tpu.memory_space<vmem>>, %arg10: memref<8x256xf32, #tpu.memory_space<vmem>>) attributes {dimension_semantics = [#tpu.dimension_semantics<parallel>], iteration_bounds = array<i64: 1>, scalar_prefetch = 0 : i64, scratch_operands = 0 : i64, tpu.core_type = #tpu.core_type<tc>, window_params = [{transform_indices = @transform_0, window_bounds = array<i64: 8, 4>}, {pipeline_mode = #tpu.pipeline_mode<synchronous>, transform_indices = @transform_1, window_bounds = array<i64: 16, 64>}, {pipeline_mode = #tpu.pipeline_mode<synchronous>, transform_indices = @transform_2, window_bounds = array<i64: 16, 64>}, {pipeline_mode = #tpu.pipeline_mode<synchronous>, transform_indices = @transform_3, window_bounds = array<i64: 8, 64>}, {pipeline_mode = #tpu.pipeline_mode<synchronous>, transform_indices = @transform_4, window_bounds = array<i64: 8, 64>}, {pipeline_mode = #tpu.pipeline_mode<synchronous>, transform_indices = @transform_5, window_bounds = array<i64: 256, 512>}, {pipeline_mode = #tpu.pipeline_mode<synchronous>, transform_indices = @transform_6, window_bounds = array<i64: 1, 512>}, {pipeline_mode = #tpu.pipeline_mode<synchronous>, transform_indices = @transform_7, window_bounds = array<i64: 512, 256>}, {pipeline_mode = #tpu.pipeline_mode<synchronous>, transform_indices = @transform_8, window_bounds = array<i64: 1, 256>}, {transform_indices = @transform_9, window_bounds = array<i64: 8, 256>}]} {
    %c0 = arith.constant 0 : index
    %c0_0 = arith.constant 0 : index
    %0 = vector.load %arg1[%c0, %c0_0] : memref<8x4xi32, #tpu.memory_space<vmem>>, vector<8x4xi32>
    %c0_1 = arith.constant 0 : index
    %c0_2 = arith.constant 0 : index
    %1 = vector.load %arg7[%c0_1, %c0_2] : memref<1x512xf32, #tpu.memory_space<vmem>>, vector<1x512xf32>
    %2 = vector.extract_strided_slice %0 {offsets = [0, 0], sizes = [8, 1], strides = [1, 1]} : vector<8x4xi32> to vector<8x1xi32>
    %3 = tpu.iota {dimensions = array<i32: 1>} : vector<8x16xi32>
    %4 = vector.broadcast %2 : vector<8x1xi32> to vector<8x16xi32>
    %5 = arith.cmpi eq, %4, %3 : vector<8x16xi32>
    %6 = arith.extui %5 : vector<8x16xi1> to vector<8x16xi32>
    %7 = arith.sitofp %6 : vector<8x16xi32> to vector<8x16xf32>
    %8 = arith.truncf %7 : vector<8x16xf32> to vector<8x16xbf16>
    %c0_3 = arith.constant 0 : index
    %c0_4 = arith.constant 0 : index
    %9 = vector.load %arg2[%c0_3, %c0_4] : memref<16x64xbf16, #tpu.memory_space<vmem>>, vector<16x64xbf16>
    %cst = arith.constant dense<0.000000e+00> : vector<8x64xf32>
    %10 = tpu.matmul %8, %9, %cst {dimension_numbers = #tpu.dot_dimension_numbers<[1], [0], [0], [1], [0, 0, 1, 1], [], []>} : vector<8x16xbf16>, vector<16x64xbf16>, vector<8x64xf32> -> vector<8x64xf32>
    %11 = arith.truncf %10 : vector<8x64xf32> to vector<8x64xbf16>
    %c0_5 = arith.constant 0 : index
    %c0_6 = arith.constant 0 : index
    %12 = vector.load %arg6[%c0_5, %c0_6] : memref<256x512xbf16, #tpu.memory_space<vmem>>, vector<64x512xbf16>
    %cst_7 = arith.constant dense<0.000000e+00> : vector<8x512xf32>
    %13 = tpu.matmul %11, %12, %cst_7 {dimension_numbers = #tpu.dot_dimension_numbers<[1], [0], [0], [1], [0, 0, 1, 1], [], []>} : vector<8x64xbf16>, vector<64x512xbf16>, vector<8x512xf32> -> vector<8x512xf32>
    %14 = vector.broadcast %1 : vector<1x512xf32> to vector<8x512xf32>
    %15 = arith.addf %14, %13 : vector<8x512xf32>
    %16 = vector.extract_strided_slice %0 {offsets = [0, 1], sizes = [8, 1], strides = [1, 1]} : vector<8x4xi32> to vector<8x1xi32>
    %17 = tpu.iota {dimensions = array<i32: 1>} : vector<8x16xi32>
    %18 = vector.broadcast %16 : vector<8x1xi32> to vector<8x16xi32>
    %19 = arith.cmpi eq, %18, %17 : vector<8x16xi32>
    %20 = arith.extui %19 : vector<8x16xi1> to vector<8x16xi32>
    %21 = arith.sitofp %20 : vector<8x16xi32> to vector<8x16xf32>
    %22 = arith.truncf %21 : vector<8x16xf32> to vector<8x16xbf16>
    %c0_8 = arith.constant 0 : index
    %c0_9 = arith.constant 0 : index
    %23 = vector.load %arg3[%c0_8, %c0_9] : memref<16x64xbf16, #tpu.memory_space<vmem>>, vector<16x64xbf16>
    %cst_10 = arith.constant dense<0.000000e+00> : vector<8x64xf32>
    %24 = tpu.matmul %22, %23, %cst_10 {dimension_numbers = #tpu.dot_dimension_numbers<[1], [0], [0], [1], [0, 0, 1, 1], [], []>} : vector<8x16xbf16>, vector<16x64xbf16>, vector<8x64xf32> -> vector<8x64xf32>
    %25 = arith.truncf %24 : vector<8x64xf32> to vector<8x64xbf16>
    %c64 = arith.constant 64 : index
    %c0_11 = arith.constant 0 : index
    %26 = vector.load %arg6[%c64, %c0_11] : memref<256x512xbf16, #tpu.memory_space<vmem>>, vector<64x512xbf16>
    %cst_12 = arith.constant dense<0.000000e+00> : vector<8x512xf32>
    %27 = tpu.matmul %25, %26, %cst_12 {dimension_numbers = #tpu.dot_dimension_numbers<[1], [0], [0], [1], [0, 0, 1, 1], [], []>} : vector<8x64xbf16>, vector<64x512xbf16>, vector<8x512xf32> -> vector<8x512xf32>
    %28 = arith.addf %15, %27 : vector<8x512xf32>
    %29 = vector.extract_strided_slice %0 {offsets = [0, 2], sizes = [8, 1], strides = [1, 1]} : vector<8x4xi32> to vector<8x1xi32>
    %30 = tpu.iota {dimensions = array<i32: 1>} : vector<8x8xi32>
    %31 = vector.broadcast %29 : vector<8x1xi32> to vector<8x8xi32>
    %32 = arith.cmpi eq, %31, %30 : vector<8x8xi32>
    %33 = arith.extui %32 : vector<8x8xi1> to vector<8x8xi32>
    %34 = arith.sitofp %33 : vector<8x8xi32> to vector<8x8xf32>
    %35 = arith.truncf %34 : vector<8x8xf32> to vector<8x8xbf16>
    %c0_13 = arith.constant 0 : index
    %c0_14 = arith.constant 0 : index
    %36 = vector.load %arg4[%c0_13, %c0_14] : memref<8x64xbf16, #tpu.memory_space<vmem>>, vector<8x64xbf16>
    %cst_15 = arith.constant dense<0.000000e+00> : vector<8x64xf32>
    %37 = tpu.matmul %35, %36, %cst_15 {dimension_numbers = #tpu.dot_dimension_numbers<[1], [0], [0], [1], [0, 0, 1, 1], [], []>} : vector<8x8xbf16>, vector<8x64xbf16>, vector<8x64xf32> -> vector<8x64xf32>
    %38 = arith.truncf %37 : vector<8x64xf32> to vector<8x64xbf16>
    %c128 = arith.constant 128 : index
    %c0_16 = arith.constant 0 : index
    %39 = vector.load %arg6[%c128, %c0_16] : memref<256x512xbf16, #tpu.memory_space<vmem>>, vector<64x512xbf16>
    %cst_17 = arith.constant dense<0.000000e+00> : vector<8x512xf32>
    %40 = tpu.matmul %38, %39, %cst_17 {dimension_numbers = #tpu.dot_dimension_numbers<[1], [0], [0], [1], [0, 0, 1, 1], [], []>} : vector<8x64xbf16>, vector<64x512xbf16>, vector<8x512xf32> -> vector<8x512xf32>
    %41 = arith.addf %28, %40 : vector<8x512xf32>
    %42 = vector.extract_strided_slice %0 {offsets = [0, 3], sizes = [8, 1], strides = [1, 1]} : vector<8x4xi32> to vector<8x1xi32>
    %43 = tpu.iota {dimensions = array<i32: 1>} : vector<8x8xi32>
    %44 = vector.broadcast %42 : vector<8x1xi32> to vector<8x8xi32>
    %45 = arith.cmpi eq, %44, %43 : vector<8x8xi32>
    %46 = arith.extui %45 : vector<8x8xi1> to vector<8x8xi32>
    %47 = arith.sitofp %46 : vector<8x8xi32> to vector<8x8xf32>
    %48 = arith.truncf %47 : vector<8x8xf32> to vector<8x8xbf16>
    %c0_18 = arith.constant 0 : index
    %c0_19 = arith.constant 0 : index
    %49 = vector.load %arg5[%c0_18, %c0_19] : memref<8x64xbf16, #tpu.memory_space<vmem>>, vector<8x64xbf16>
    %cst_20 = arith.constant dense<0.000000e+00> : vector<8x64xf32>
    %50 = tpu.matmul %48, %49, %cst_20 {dimension_numbers = #tpu.dot_dimension_numbers<[1], [0], [0], [1], [0, 0, 1, 1], [], []>} : vector<8x8xbf16>, vector<8x64xbf16>, vector<8x64xf32> -> vector<8x64xf32>
    %51 = arith.truncf %50 : vector<8x64xf32> to vector<8x64xbf16>
    %c192 = arith.constant 192 : index
    %c0_21 = arith.constant 0 : index
    %52 = vector.load %arg6[%c192, %c0_21] : memref<256x512xbf16, #tpu.memory_space<vmem>>, vector<64x512xbf16>
    %cst_22 = arith.constant dense<0.000000e+00> : vector<8x512xf32>
    %53 = tpu.matmul %51, %52, %cst_22 {dimension_numbers = #tpu.dot_dimension_numbers<[1], [0], [0], [1], [0, 0, 1, 1], [], []>} : vector<8x64xbf16>, vector<64x512xbf16>, vector<8x512xf32> -> vector<8x512xf32>
    %54 = arith.addf %41, %53 : vector<8x512xf32>
    %cst_23 = arith.constant 0.000000e+00 : f32
    %55 = vector.broadcast %cst_23 : f32 to vector<8x512xf32>
    %56 = arith.maximumf %54, %55 : vector<8x512xf32>
    %57 = arith.truncf %56 : vector<8x512xf32> to vector<8x512xbf16>
    %c0_24 = arith.constant 0 : index
    %c0_25 = arith.constant 0 : index
    %58 = vector.load %arg8[%c0_24, %c0_25] : memref<512x256xbf16, #tpu.memory_space<vmem>>, vector<512x256xbf16>
    %cst_26 = arith.constant dense<0.000000e+00> : vector<8x256xf32>
    %59 = tpu.matmul %57, %58, %cst_26 {dimension_numbers = #tpu.dot_dimension_numbers<[1], [0], [0], [1], [0, 0, 1, 1], [], []>} : vector<8x512xbf16>, vector<512x256xbf16>, vector<8x256xf32> -> vector<8x256xf32>
    %c0_27 = arith.constant 0 : index
    %c0_28 = arith.constant 0 : index
    %60 = vector.load %arg9[%c0_27, %c0_28] : memref<1x256xf32, #tpu.memory_space<vmem>>, vector<1x256xf32>
    %61 = vector.broadcast %60 : vector<1x256xf32> to vector<8x256xf32>
    %62 = arith.addf %59, %61 : vector<8x256xf32>
    %c0_29 = arith.constant 0 : index
    %c0_30 = arith.constant 0 : index
    %63 = vector.load %arg10[%c0_29, %c0_30] : memref<8x256xf32, #tpu.memory_space<vmem>>, vector<8x256xf32>
    tpu.vector_store %arg10[%c0_29, %c0_30], %62 {strides = array<i32>} : memref<8x256xf32, #tpu.memory_space<vmem>>, vector<8x256xf32>,
    return
  }
  func.func @transform_0(%arg0: i32) -> (i32, i32) {
    %c0_i32 = arith.constant 0 : i32
    %c0_i32_0 = arith.constant 0 : i32
    return %arg0, %c0_i32 : i32, i32
  }
  func.func @transform_1(%arg0: i32) -> (i32, i32) {
    %c0_i32 = arith.constant 0 : i32
    %c0_i32_0 = arith.constant 0 : i32
    %c0_i32_1 = arith.constant 0 : i32
    return %c0_i32, %c0_i32_0 : i32, i32
  }
  func.func @transform_2(%arg0: i32) -> (i32, i32) {
    %c0_i32 = arith.constant 0 : i32
    %c0_i32_0 = arith.constant 0 : i32
    %c0_i32_1 = arith.constant 0 : i32
    return %c0_i32, %c0_i32_0 : i32, i32
  }
  func.func @transform_3(%arg0: i32) -> (i32, i32) {
    %c0_i32 = arith.constant 0 : i32
    %c0_i32_0 = arith.constant 0 : i32
    %c0_i32_1 = arith.constant 0 : i32
    return %c0_i32, %c0_i32_0 : i32, i32
  }
  func.func @transform_4(%arg0: i32) -> (i32, i32) {
    %c0_i32 = arith.constant 0 : i32
    %c0_i32_0 = arith.constant 0 : i32
    %c0_i32_1 = arith.constant 0 : i32
    return %c0_i32, %c0_i32_0 : i32, i32
  }
  func.func @transform_5(%arg0: i32) -> (i32, i32) {
    %c0_i32 = arith.constant 0 : i32
    %c0_i32_0 = arith.constant 0 : i32
    %c0_i32_1 = arith.constant 0 : i32
    return %c0_i32, %c0_i32_0 : i32, i32
  }
  func.func @transform_6(%arg0: i32) -> (i32, i32) {
    %c0_i32 = arith.constant 0 : i32
    %c0_i32_0 = arith.constant 0 : i32
    %c0_i32_1 = arith.constant 0 : i32
    return %c0_i32, %c0_i32_0 : i32, i32
  }
  func.func @transform_7(%arg0: i32) -> (i32, i32) {
    %c0_i32 = arith.constant 0 : i32
    %c0_i32_0 = arith.constant 0 : i32
    %c0_i32_1 = arith.constant 0 : i32
    return %c0_i32, %c0_i32_0 : i32, i32
  }
  func.func @transform_8(%arg0: i32) -> (i32, i32) {
    %c0_i32 = arith.constant 0 : i32
    %c0_i32_0 = arith.constant 0 : i32
    %c0_i32_1 = arith.constant 0 : i32
    return %c0_i32, %c0_i32_0 : i32, i32
  }
  func.func @transform_9(%arg0: i32) -> (i32, i32) {
    %c0_i32 = arith.constant 0 : i32
    %c0_i32_0 = arith.constant 0 : i32
    return %arg0, %c0_i32 : i32, i32
  }
}

</mosaic_0001>

<bundles_post_ra>
// kernel: tpu_custom_call.1
= control target key start
LH: loop header
LB: loop body
LE: loop exit
PB: predicated region body
PF: predicated region fallthrough
CT: control target
= control target key end

     0   :  { %14 = vsyncpa [#allocation3], 0  ;;  %s2230_s0 = inlined_call_operand.vmem [shape: s32[8,4], index: 0, kind: input, shape index: {}]   ;;  %s2231_s1 = inlined_call_operand.vmem [shape: bf16[16,64], index: 1, kind: input, shape index: {}]   ;;  %s2232_s2 = inlined_call_operand.vmem [shape: bf16[16,64], index: 2, kind: input, shape index: {}]   ;;  %s2233_s3 = inlined_call_operand.vmem [shape: bf16[8,64], index: 3, kind: input, shape index: {}]   ;;  %s2234_s4 = inlined_call_operand.vmem [shape: bf16[8,64], index: 4, kind: input, shape index: {}]   ;;  %s2235_s5 = inlined_call_operand.hbm [shape: bf16[256,512], index: 5, kind: input, shape index: {}]   ;;  %s2236_s6 = inlined_call_operand.vmem [shape: f32[1,512], index: 6, kind: input, shape index: {}]   ;;  %s2237_s7 = inlined_call_operand.hbm [shape: bf16[512,256], index: 7, kind: input, shape index: {}]   ;;  %s2238_s8 = inlined_call_operand.vmem [shape: f32[1,256], index: 8, kind: input, shape index: {}]   ;;  %s2239_s9 = inlined_call_operand.hbm [shape: f32[8,256], index: 9, kind: output, shape index: {}]  }
   0x1   :  { %15 = vsyncpa [#allocation6], 0 }
   0x2   :  { %16 = vsyncpa [#allocation4], 0  ;;  %s2057_s30 = smov [#allocation2]   ;;  %s1985_s13 = scalar_lea.hbm %s2235_s5, 8192 }
   0x3   :  { %s32_s10 = sshll.u32 %s2057_s30, 4  ;;  %p1986_p0 = scmp.ne.s32.totalorder %s2235_s5, %s1985_s13  ;;  %s33_s10 = int_to_ptr.vmem [resolvable:$true] %s32_s10 }
   0x4   :  { %p1989_p1 = scmp.lt.u32.totalorder %s1985_s13, %s2235_s5 }
   0x6   :  { %p1991_p2 = pnand %p1989_p1, %p1986_p0 }
   0x8   :  { %1994 = shalt.err (!%p1991_p2)
}
   0x9   :  { %s1995_s18 = scalar_lea.vmem %s33_s10, 8192  ;;  %p2000_p4 = scmp.lt.s32.totalorder %s33_s10, %s33_s10 }
   0xa   :  { %p1996_p3 = scmp.ne.s32.totalorder %s33_s10, %s1995_s18  ;;  %p2001_p5 = scmp.lt.s32.totalorder %s1995_s18, %s1995_s18 }
   0xc   :  { %p2002_p6 = por %p2001_p5, %p2000_p4 }
   0xe   :  { %p2003_p7 = pnand %p2002_p6, %p1996_p3 }
  0x10   :  { %2006 = shalt.err (!%p2003_p7)
}
  0x11   :  { %s2058_s19 = smov 256   ;;  %s2059_s20 = smov 16  }
  0x12   :  { %38 = dma.hbm_to_vmem [thread:$0]  %s2235_s5, 8192, %s33_s10, [#allocation3], %s2058_s19, %s2058_s19, %s2059_s20  }
  0x13   :  { %s2060_s23 = smov [#allocation5]   ;;  %s2007_s27 = scalar_lea.hbm %s2237_s7, 8192 }
  0x14   :  { %s46_s24 = sshll.u32 %s2060_s23, 4  ;;  %p2008_p8 = scmp.ne.s32.totalorder %s2237_s7, %s2007_s27  ;;  %s47_s24 = int_to_ptr.vmem [resolvable:$true] %s46_s24 }
  0x15   :  { %p2011_p9 = scmp.lt.u32.totalorder %s2007_s27, %s2237_s7 }
  0x17   :  { %p2013_p10 = pnand %p2011_p9, %p2008_p8 }
  0x19   :  { %2016 = shalt.err (!%p2013_p10)
}
  0x1a   :  { %s2017_s12 = scalar_lea.vmem %s47_s24, 8192  ;;  %p2022_p12 = scmp.lt.s32.totalorder %s47_s24, %s47_s24 }
  0x1b   :  { %p2018_p11 = scmp.ne.s32.totalorder %s47_s24, %s2017_s12  ;;  %p2023_p13 = scmp.lt.s32.totalorder %s2017_s12, %s2017_s12 }
  0x1d   :  { %p2024_p0 = por %p2023_p13, %p2022_p12 }
  0x1f   :  { %p2025_p1 = pnand %p2024_p0, %p2018_p11 }
  0x21   :  { %2028 = shalt.err (!%p2025_p1)
}
  0x22   :  { %s2061_s5 = smov 128   ;;  %s2062_s10 = smov 8  }
  0x23   :  { %52 = dma.hbm_to_vmem [thread:$0]  %s2237_s7, 8192, %s47_s24, [#allocation6], %s2061_s5, %s2061_s5, %s2062_s10  }
  0x24   :  { %2051 = dma.done.wait [#allocation3], 8192  }
  0x25   :  { %2052 = vsyncadd [#allocation3], 4294959104 }
  0x26   :  { %2053 = dma.done.wait [#allocation6], 8192  }
  0x27   :  { %2054 = vsyncadd [#allocation6], 4294959104  ;;  %v2063_v0 = vmov 0   ;;  %v2064_v1 = vmov 0.0   ;;  %v2150_v2 = vld [vmem:[%s2230_s0] sm:$0xff]  ;;  %vm2065_vm0 = vmmov 0   ;;  %v64_v14 = vlaneseq }
  0x28   :  { %1786 = vset.pattern.permute.xlu0 %v2063_v0  ;;  %1717 = vmatprep.subr.bf16.mxu0 %v2064_v1  ;;  %v1791_v3 = vld [vmem:[%s2231_s1] sm:$0xff]   ;;  %v2066_v6 = vmov 1   ;;  %v1797_v7 = vld [vmem:[#allocation2 + $0xc] ss:$16 sps:$4 sm:$0xff]   ;;  %vm81_vm2 = vcmask 130048   ;;  %v2067_v27 = vmov 2  }
  0x29   :  { %258 = vmatprep.mubr.bf16.mxu1 %v2063_v0  ;;  %67 = vperm.xlu0 %1786, %v2150_v2   ;;  %v1792_v4 = vld [vmem:[#allocation2 + $0x4] ss:$16 sps:$4 sm:$0xff]   ;;  %v1794_v5 = vld [vmem:[#allocation2] ss:$16 sps:$4 sm:$0xff]   ;;  %v2161_v15 = vand.u32 127, %v64_v14  ;;  %vm222_vm3 = vcmask 523264  }
  0x2a   :  { %1718 = vmatpush3.bf16.msra.mxu0 %v1791_v3  ;;  %1719 = vmatprep.mubr.msk.bf16.mxu0 %vm2065_vm0, %v2064_v1  ;;  %v1798_v8 = vld [vmem:[#allocation2 + $0x24] ss:$16 sps:$4 sm:$0xff]   ;;  %v1800_v9 = vld [vmem:[#allocation2 + $0x20] ss:$16 sps:$4 sm:$0xff]   ;;  %v1795_v18 = vld [vmem:[#allocation2 + $0x8] ss:$16 sps:$4 sm:$0xff]  }
  0x2b   :  { %226 = vmatprep.subr.bf16.mxu1 %v1792_v4  ;;  %267 = vmatprep.subr.bf16.mxu0 %v1797_v7  ;;  %v1804_v10 = vld [vmem:[#allocation2 + $0x44] ss:$16 sps:$4 sm:$0xff]   ;;  %v1806_v11 = vld [vmem:[#allocation2 + $0x40] ss:$16 sps:$4 sm:$0xff]   ;;  %v1803_v20 = vld [vmem:[#allocation2 + $0x2c] ss:$16 sps:$4 sm:$0xff]  }
  0x2c   :  { %227 = vmatpush1.bf16.msra.mxu1 %v1794_v5  ;;  %v1810_v12 = vld [vmem:[#allocation2 + $0x64] ss:$16 sps:$4 sm:$0xff]   ;;  %v1812_v13 = vld [vmem:[#allocation2 + $0x60] ss:$16 sps:$4 sm:$0xff]   ;;  %v1801_v21 = vld [vmem:[#allocation2 + $0x28] ss:$16 sps:$4 sm:$0xff]   ;;  %1788 = vset.pattern.permute.xlu1 %v2067_v27 }
  0x2d   :  { %1787 = vset.pattern.permute.xlu0 %v2066_v6  ;;  %228 = vmatprep.subr.bf16.mxu1 %v1798_v8  ;;  %v1809_v22 = vld [vmem:[#allocation2 + $0x4c] ss:$16 sps:$4 sm:$0xff]   ;;  %v1807_v23 = vld [vmem:[#allocation2 + $0x48] ss:$16 sps:$4 sm:$0xff]   ;;  %v1816_v30 = vld [vmem:[%s2232_s2] sm:$0xff]   ;;  %v2068_v53 = vmov 3  }
  0x2e   :  { %334 = vperm.xlu0 %1787, %v2150_v2   ;;  %v1815_v24 = vld [vmem:[#allocation2 + $0x6c] ss:$16 sps:$4 sm:$0xff]   ;;  %v1813_v25 = vld [vmem:[#allocation2 + $0x68] ss:$16 sps:$4 sm:$0xff]   ;;  %578 = vperm.xlu1 %1788, %v2150_v2   ;;  %v1822_v34 = vld [vmem:[#allocation2 + $0x84] ss:$16 sps:$4 sm:$0xff]  }
  0x2f   :  { %v1819_v26 = vld [vmem:[#allocation2 + $0x8c] ss:$16 sps:$4 sm:$0xff]   ;;  %v1817_v33 = vld [vmem:[#allocation2 + $0x88] ss:$16 sps:$4 sm:$0xff]   ;;  %v1820_v42 = vld [vmem:[#allocation2 + $0x80] ss:$16 sps:$4 sm:$0xff]  }
  0x30   :  { %229 = vmatpush1.bf16.msra.mxu1 %v1800_v9  ;;  %v1825_v36 = vld [vmem:[#allocation2 + $0xac] ss:$16 sps:$4 sm:$0xff]   ;;  %v1823_v39 = vld [vmem:[#allocation2 + $0xa8] ss:$16 sps:$4 sm:$0xff]   ;;  %v1828_v43 = vld [vmem:[#allocation2 + $0xa4] ss:$16 sps:$4 sm:$0xff]  }
  0x31   :  { %230 = vmatprep.subr.bf16.mxu1 %v1804_v10  ;;  %v1831_v40 = vld [vmem:[#allocation2 + $0xcc] ss:$16 sps:$4 sm:$0xff]   ;;  %v1829_v44 = vld [vmem:[#allocation2 + $0xc8] ss:$16 sps:$4 sm:$0xff]   ;;  %v1826_v46 = vld [vmem:[#allocation2 + $0xa0] ss:$16 sps:$4 sm:$0xff]  }
  0x32   :  { %v1837_v45 = vld [vmem:[#allocation2 + $0xec] ss:$16 sps:$4 sm:$0xff]   ;;  %v1834_v47 = vld [vmem:[#allocation2 + $0xc4] ss:$16 sps:$4 sm:$0xff]   ;;  %v1835_v48 = vld [vmem:[#allocation2 + $0xe8] ss:$16 sps:$4 sm:$0xff]   ;;  %1789 = vset.pattern.permute.xlu1 %v2068_v53  ;;  %1790 = vset.pattern.permute.xlu0 %v2068_v53 }
  0x33   :  { %v1832_v49 = vld [vmem:[#allocation2 + $0xc0] ss:$16 sps:$4 sm:$0xff]   ;;  %v1840_v50 = vld [vmem:[#allocation2 + $0xe4] ss:$16 sps:$4 sm:$0xff]   ;;  %820 = vperm.xlu1 %1789, %v2150_v2   ;;  %vm589_vm5 = vcmask 1043456   ;;  %vm585_vm7 = vcmask 64512  }
  0x34   :  { %231 = vmatpush1.bf16.msra.mxu1 %v1806_v11  ;;  %v1838_v51 = vld [vmem:[#allocation2 + $0xe0] ss:$16 sps:$4 sm:$0xff]   ;;  %v1843_v52 = vld [vmem:[#allocation2 + $0x104] ss:$16 sps:$4 sm:$0xff]   ;;  %v1846_v61 = vld [vmem:[#allocation2 + $0x10c] ss:$16 sps:$4 sm:$0xff]  }
  0x35   :  { %232 = vmatprep.subr.bf16.mxu1 %v1810_v12  ;;  %v584_v54 = vld [vmem:[%s2233_s3] sm:$0xf]  ;;  %v1849_v63 = vld [vmem:[#allocation2 + $0x124] ss:$16 sps:$4 sm:$0xff]   ;;  %v1844_v7 = vld [vmem:[#allocation2 + $0x108] ss:$16 sps:$4 sm:$0xff]  }
  0x36   :  { %v591_v59 = vsel %vm589_vm5, %v584_v54, 0  ;;  %v1841_v60 = vld [vmem:[#allocation2 + $0x100] ss:$16 sps:$4 sm:$0xff]   ;;  %v1855_v5 = vld [vmem:[#allocation2 + $0x144] ss:$16 sps:$4 sm:$0xff]   ;;  %s2069_s22 = smov [#allocation7]  }
  0x37   :  { %v1847_v4 = vld [vmem:[#allocation2 + $0x120] ss:$16 sps:$4 sm:$0xff]   ;;  %v1852_v8 = vld [vmem:[#allocation2 + $0x12c] ss:$16 sps:$4 sm:$0xff]   ;;  %v1861_v10 = vld [vmem:[#allocation2 + $0x164] ss:$16 sps:$4 sm:$0xff]  }
  0x38   :  { %233 = vmatpush1.bf16.msra.mxu1 %v1812_v13  ;;  %v1853_v9 = vld [vmem:[#allocation2 + $0x140] ss:$16 sps:$4 sm:$0xff]   ;;  %v1850_v11 = vld [vmem:[#allocation2 + $0x128] ss:$16 sps:$4 sm:$0xff]   ;;  %v1858_v12 = vld [vmem:[#allocation2 + $0x14c] ss:$16 sps:$4 sm:$0xff]  }
  0x39   :  { %1723 = vmatprep.subr.bf16.mxu1 %v2064_v1  ;;  %v1859_v13 = vld [vmem:[#allocation2 + $0x160] ss:$16 sps:$4 sm:$0xff]   ;;  %v1868_v27 = vld [vmem:[#allocation2 + $0x188] ss:$16 sps:$4 sm:$0xff]   ;;  %s1553_s23 = sshll.u32 %s2069_s22, 4  ;;  %s1554_s23 = int_to_ptr.vmem [resolvable:$true] %s1553_s23 }
  0x3a   :  { %v1895_v53 = vld [vmem:[#allocation5 + $0x10] ss:$8 sps:$4 sm:$0xff]   ;;  %p2034_p3 = scmp.lt.s32.totalorder %s1554_s23, %s1554_s23 }
  0x3b   :  { %v1898_v54 = vld [vmem:[#allocation5 + $0x110] ss:$8 sps:$4 sm:$0xff]  }
  0xa8   :  { %v68_v16 = vpop.permute.xlu0 %67 }
  0xa9   :  { %vm69_vm1 = vcmp.eq.s32.totalorder %v68_v16, %v2161_v15  ;;  %v1856_v16 = vld [vmem:[#allocation2 + $0x148] ss:$16 sps:$4 sm:$0xff]  }
  0xaa   :  { %v1563_v17 = vsel %vm69_vm1, 1.0, %v2064_v1 }
  0xab   :  { %v72_v19 = vpack.c.bf16 %v1563_v17, %v1563_v17  ;;  %v1864_v17 = vld [vmem:[#allocation2 + $0x16c] ss:$16 sps:$4 sm:$0xff]  }
  0xad   :  { %1720 = vmatmul.mubr.msk.bf16.vlgmr.msra.gmra.mrb[0].mxu0 %vm81_vm2, %v72_v19  ;;  %v335_v28 = vpop.permute.xlu0 %334  ;;  %v579_v55 = vpop.permute.xlu1 %578  ;;  %v1870_v19 = vld [vmem:[#allocation2 + $0x18c] ss:$16 sps:$4 sm:$0xff]  }
  0xae   :  { %268 = vmatpush1.bf16.msra.mxu0 %v1795_v18  ;;  %299 = vmatprep.mubr.bf16.mxu0 %v2063_v0  ;;  %vm336_vm4 = vcmp.eq.s32.totalorder %v335_v28, %v2161_v15  ;;  %vm580_vm6 = vcmp.eq.s32.totalorder %v579_v55, %v2161_v15  ;;  %v1862_v18 = vld [vmem:[#allocation2 + $0x168] ss:$16 sps:$4 sm:$0xff]   ;;  %v1903_v55 = vld [vmem:[#allocation5 + $0x24] ss:$8 sps:$4 sm:$0xff]  }
  0xaf   :  { %269 = vmatprep.subr.bf16.mxu0 %v1803_v20  ;;  %v1584_v38 = vsel %vm336_vm4, 1.0, %v2064_v1  ;;  %v1605_v2 = vsel %vm580_vm6, 1.0, %v2064_v1  ;;  %v826_v20 = vld [vmem:[%s2234_s4] sm:$0xf] }
  0xb0   :  { %v339_v41 = vpack.c.bf16 %v1584_v38, %v1584_v38  ;;  %v583_v6 = vpack.c.bf16 %v1605_v2, %v1605_v2  ;;  %v1871_v38 = vld [vmem:[#allocation2 + $0x1a0] ss:$16 sps:$4 sm:$0xff]  }
  0xb1   :  { %v1913_v2 = vld [vmem:[#allocation5 + $0x40] ss:$8 sps:$4 sm:$0xff]  }
  0xb2   :  { %270 = vmatpush1.bf16.msra.mxu0 %v1801_v21  ;;  %v821_v21 = vpop.permute.xlu1 %820 }
  0xb3   :  { %271 = vmatprep.subr.bf16.mxu0 %v1809_v22  ;;  %vm822_vm8 = vcmp.eq.s32.totalorder %v821_v21, %v2161_v15  ;;  %v1882_v15 = vld [vmem:[#allocation2 + $0x1cc] ss:$16 sps:$4 sm:$0xff]   ;;  %v1937_v21 = vld [vmem:[#allocation5 + $0x80] ss:$8 sps:$4 sm:$0xff]  }
  0xb6   :  { %272 = vmatpush1.bf16.msra.mxu0 %v1807_v23 }
  0xb7   :  { %273 = vmatprep.subr.bf16.mxu0 %v1815_v24 }
  0xba   :  { %274 = vmatpush1.bf16.msra.mxu0 %v1813_v25  ;;  %v831_v25 = vsel %vm589_vm5, %v826_v20, 0  ;;  %v1942_v20 = vld [vmem:[#allocation5 + $0x184] ss:$8 sps:$4 sm:$0xff]  }
  0xbb   :  { %532 = vmatprep.subr.bf16.mxu0 %v1819_v26  ;;  %v1867_v26 = vld [vmem:[#allocation2 + $0x184] ss:$16 sps:$4 sm:$0xff]  }
 0x180   :  { %v119_v29 = vpop.f32.mrb[0].mxu0 }
 0x181   :  { %v125_v31 = vpack.c.bf16 %v119_v29, %v119_v29  ;;  %v1721_v32 = vpop.f32.mrb[1].mxu0  ;;  %v1876_v29 = vld [vmem:[#allocation2 + $0x1ac] ss:$16 sps:$4 sm:$0xff]  }
 0x182   :  { %v122_v35 = vpop.f32.mrb[2].mxu0  ;;  %v1874_v32 = vld [vmem:[#allocation2 + $0x1a8] ss:$16 sps:$4 sm:$0xff]  }
 0x183   :  { %v1722_v37 = vpop.f32.mrb[3].mxu0  ;;  %1582 = vmatmul.mubr.msk.bf16.vlgmr.msra.gmra.mrb[0].mxu1 %vm222_vm3, %v125_v31  ;;  %1583 = vmatmul.mubr.msk.bf16.vlgmr.msra.gmra.mrb[4].mxu0 %vm222_vm3, %v125_v31  ;;  %v1625_v31 = vsel %vm822_vm8, 1.0, %v2064_v1  ;;  %v1873_v35 = vld [vmem:[#allocation2 + $0x1a4] ss:$16 sps:$4 sm:$0xff]  }
 0x184   :  { %1724 = vmatpush3.bf16.msra.mxu1 %v1816_v30  ;;  %1725 = vmatprep.mubr.msk.bf16.mxu1 %vm2065_vm0, %v2064_v1  ;;  %v1888_v37 = vld [vmem:[#allocation2 + $0x1ec] ss:$16 sps:$4 sm:$0xff]  }
 0x185   :  { %491 = vmatprep.subr.bf16.mxu1 %v1822_v34  ;;  %533 = vmatpush1.bf16.msra.mxu0 %v1817_v33  ;;  %v825_v33 = vpack.c.bf16 %v1625_v31, %v1625_v31  ;;  %v1865_v34 = vld [vmem:[#allocation2 + $0x180] ss:$16 sps:$4 sm:$0xff]   ;;  %v1957_v31 = vld [vmem:[#allocation5 + $0xb4] ss:$8 sps:$4 sm:$0xff]  }
 0x186   :  { %534 = vmatprep.subr.bf16.mxu0 %v1825_v36  ;;  %564 = vmatprep.mubr.bf16.mxu0 %v2063_v0  ;;  %v1880_v36 = vld [vmem:[#allocation2 + $0x1c8] ss:$16 sps:$4 sm:$0xff]  }
 0x189   :  { %535 = vmatpush1.bf16.msra.mxu0 %v1823_v39  ;;  %v1886_v39 = vld [vmem:[#allocation2 + $0x1e8] ss:$16 sps:$4 sm:$0xff]  }
 0x18a   :  { %536 = vmatprep.subr.bf16.mxu0 %v1831_v40  ;;  %v1877_v40 = vld [vmem:[#allocation2 + $0x1c0] ss:$16 sps:$4 sm:$0xff]  }
 0x18b   :  { %1726 = vmatmul.mubr.msk.bf16.vlgmr.msra.gmra.mrb[4].mxu1 %vm81_vm2, %v339_v41  ;;  %v1885_v41 = vld [vmem:[#allocation2 + $0x1e4] ss:$16 sps:$4 sm:$0xff]  }
 0x18c   :  { %492 = vmatpush1.bf16.msra.mxu1 %v1820_v42  ;;  %523 = vmatprep.mubr.bf16.mxu1 %v2063_v0  ;;  %v1883_v42 = vld [vmem:[#allocation2 + $0x1e0] ss:$16 sps:$4 sm:$0xff]  }
 0x18d   :  { %493 = vmatprep.subr.bf16.mxu1 %v1828_v43  ;;  %537 = vmatpush1.bf16.msra.mxu0 %v1829_v44  ;;  %v1891_v43 = vld [vmem:[#allocation5 + $0x4] ss:$8 sps:$4 sm:$0xff]  }
 0x18e   :  { %538 = vmatprep.subr.bf16.mxu0 %v1837_v45  ;;  %v1894_v44 = vld [vmem:[#allocation5 + $0x104] ss:$8 sps:$4 sm:$0xff]  }
 0x190   :  { %494 = vmatpush1.bf16.msra.mxu1 %v1826_v46  ;;  %v1892_v46 = vld [vmem:[#allocation5 + $0x100] ss:$8 sps:$4 sm:$0xff]  }
 0x191   :  { %495 = vmatprep.subr.bf16.mxu1 %v1834_v47  ;;  %539 = vmatpush1.bf16.msra.mxu0 %v1835_v48 }
 0x192   :  { %1729 = vmatprep.subr.bf16.mxu0 %v2064_v1 }
 0x194   :  { %496 = vmatpush1.bf16.msra.mxu1 %v1832_v49  ;;  %v1897_v49 = vld [vmem:[#allocation5 + $0x14] ss:$8 sps:$4 sm:$0xff]  }
 0x195   :  { %497 = vmatprep.subr.bf16.mxu1 %v1840_v50  ;;  %v1900_v50 = vld [vmem:[#allocation5 + $0x114] ss:$8 sps:$4 sm:$0xff]  }
 0x198   :  { %498 = vmatpush1.bf16.msra.mxu1 %v1838_v51 }
 0x199   :  { %733 = vmatprep.subr.bf16.mxu1 %v1843_v52 }
 0x25e   :  { %v385_v56 = vpop.f32.mrb[4].mxu1 }
 0x25f   :  { %v391_v57 = vpack.c.bf16 %v385_v56, %v385_v56  ;;  %v1727_v58 = vpop.f32.mrb[5].mxu1  ;;  %v1906_v56 = vld [vmem:[#allocation5 + $0x124] ss:$8 sps:$4 sm:$0xff]  }
 0x260   :  { %v388_v62 = vpop.f32.mrb[6].mxu1  ;;  %v1904_v58 = vld [vmem:[#allocation5 + $0x120] ss:$8 sps:$4 sm:$0xff]  }
 0x261   :  { %v1728_v3 = vpop.f32.mrb[7].mxu1  ;;  %1603 = vmatmul.mubr.msk.bf16.vlgmr.msra.gmra.mrb[0].mxu1 %vm222_vm3, %v391_v57  ;;  %1604 = vmatmul.mubr.msk.bf16.vlgmr.msra.gmra.mrb[4].mxu0 %vm222_vm3, %v391_v57  ;;  %v1901_v57 = vld [vmem:[#allocation5 + $0x20] ss:$8 sps:$4 sm:$0xff]   ;;  %v1910_v62 = vld [vmem:[#allocation5 + $0x130] ss:$8 sps:$4 sm:$0xff]  }
 0x262   :  { %1730 = vmatpush3.bf16.msra.mxu0 %v591_v59  ;;  %1731 = vmatprep.mubr.msk.bf16.mxu0 %vm2065_vm0, %v2064_v1  ;;  %v1909_v59 = vld [vmem:[#allocation5 + $0x34] ss:$8 sps:$4 sm:$0xff]   ;;  %v1918_v3 = vld [vmem:[#allocation5 + $0x144] ss:$8 sps:$4 sm:$0xff]  }
 0x263   :  { %734 = vmatpush1.bf16.msra.mxu1 %v1841_v60  ;;  %774 = vmatprep.subr.bf16.mxu0 %v1846_v61  ;;  %v1912_v60 = vld [vmem:[#allocation5 + $0x134] ss:$8 sps:$4 sm:$0xff]   ;;  %v1907_v61 = vld [vmem:[#allocation5 + $0x30] ss:$8 sps:$4 sm:$0xff]  }
 0x264   :  { %735 = vmatprep.subr.bf16.mxu1 %v1849_v63  ;;  %765 = vmatprep.mubr.bf16.mxu1 %v2063_v0  ;;  %v1915_v63 = vld [vmem:[#allocation5 + $0x44] ss:$8 sps:$4 sm:$0xff]  }
 0x267   :  { %736 = vmatpush1.bf16.msra.mxu1 %v1847_v4  ;;  %v1916_v4 = vld [vmem:[#allocation5 + $0x140] ss:$8 sps:$4 sm:$0xff]  }
 0x268   :  { %737 = vmatprep.subr.bf16.mxu1 %v1855_v5  ;;  %v1921_v5 = vld [vmem:[#allocation5 + $0x54] ss:$8 sps:$4 sm:$0xff]  }
 0x269   :  { %1732 = vmatmul.mubr.msk.bf16.vlgmr.msra.gmra.mrb[8].mxu0 %vm585_vm7, %v583_v6  ;;  %v1924_v6 = vld [vmem:[#allocation5 + $0x154] ss:$8 sps:$4 sm:$0xff]  }
 0x26a   :  { %775 = vmatpush1.bf16.msra.mxu0 %v1844_v7  ;;  %806 = vmatprep.mubr.bf16.mxu0 %v2063_v0  ;;  %v1919_v7 = vld [vmem:[#allocation5 + $0x50] ss:$8 sps:$4 sm:$0xff]  }
 0x26b   :  { %776 = vmatprep.subr.bf16.mxu0 %v1852_v8  ;;  %738 = vmatpush1.bf16.msra.mxu1 %v1853_v9  ;;  %v1922_v8 = vld [vmem:[#allocation5 + $0x150] ss:$8 sps:$4 sm:$0xff]   ;;  %v1927_v9 = vld [vmem:[#allocation5 + $0x64] ss:$8 sps:$4 sm:$0xff]  }
 0x26c   :  { %739 = vmatprep.subr.bf16.mxu1 %v1861_v10  ;;  %v1930_v10 = vld [vmem:[#allocation5 + $0x164] ss:$8 sps:$4 sm:$0xff]  }
 0x26e   :  { %777 = vmatpush1.bf16.msra.mxu0 %v1850_v11  ;;  %v1925_v11 = vld [vmem:[#allocation5 + $0x60] ss:$8 sps:$4 sm:$0xff]  }
 0x26f   :  { %778 = vmatprep.subr.bf16.mxu0 %v1858_v12  ;;  %740 = vmatpush1.bf16.msra.mxu1 %v1859_v13  ;;  %v1928_v12 = vld [vmem:[#allocation5 + $0x160] ss:$8 sps:$4 sm:$0xff]   ;;  %v1933_v13 = vld [vmem:[#allocation5 + $0x74] ss:$8 sps:$4 sm:$0xff]  }
 0x270   :  { %1735 = vmatprep.subr.bf16.mxu1 %v2064_v1 }
 0x272   :  { %779 = vmatpush1.bf16.msra.mxu0 %v1856_v16  ;;  %v1936_v16 = vld [vmem:[#allocation5 + $0x174] ss:$8 sps:$4 sm:$0xff]  }
 0x273   :  { %780 = vmatprep.subr.bf16.mxu0 %v1864_v17  ;;  %v1931_v17 = vld [vmem:[#allocation5 + $0x70] ss:$8 sps:$4 sm:$0xff]  }
 0x276   :  { %781 = vmatpush1.bf16.msra.mxu0 %v1862_v18  ;;  %v1934_v18 = vld [vmem:[#allocation5 + $0x170] ss:$8 sps:$4 sm:$0xff]  }
 0x277   :  { %1014 = vmatprep.subr.bf16.mxu0 %v1870_v19  ;;  %v1939_v19 = vld [vmem:[#allocation5 + $0x84] ss:$8 sps:$4 sm:$0xff]  }
 0x33c   :  { %v627_v22 = vpop.f32.mrb[8].mxu0 }
 0x33d   :  { %v633_v23 = vpack.c.bf16 %v627_v22, %v627_v22  ;;  %v1733_v24 = vpop.f32.mrb[9].mxu0  ;;  %v1940_v22 = vld [vmem:[#allocation5 + $0x180] ss:$8 sps:$4 sm:$0xff]  }
 0x33e   :  { %v630_v28 = vpop.f32.mrb[10].mxu0  ;;  %v1948_v24 = vld [vmem:[#allocation5 + $0x194] ss:$8 sps:$4 sm:$0xff]  }
 0x33f   :  { %v1734_v30 = vpop.f32.mrb[11].mxu0  ;;  %1623 = vmatmul.mubr.msk.bf16.vlgmr.msra.gmra.mrb[0].mxu1 %vm222_vm3, %v633_v23  ;;  %1624 = vmatmul.mubr.msk.bf16.vlgmr.msra.gmra.mrb[4].mxu0 %vm222_vm3, %v633_v23  ;;  %v1945_v23 = vld [vmem:[#allocation5 + $0x94] ss:$8 sps:$4 sm:$0xff]   ;;  %v1954_v28 = vld [vmem:[#allocation5 + $0x1a4] ss:$8 sps:$4 sm:$0xff]  }
 0x340   :  { %1736 = vmatpush3.bf16.msra.mxu1 %v831_v25  ;;  %1737 = vmatprep.mubr.msk.bf16.mxu1 %vm2065_vm0, %v2064_v1  ;;  %v1879_v1 = vld [vmem:[#allocation2 + $0x1c4] ss:$16 sps:$4 sm:$0xff]   ;;  %v1943_v25 = vld [vmem:[#allocation5 + $0x90] ss:$8 sps:$4 sm:$0xff]   ;;  %v1952_v30 = vld [vmem:[#allocation5 + $0x1a0] ss:$8 sps:$4 sm:$0xff]  }
 0x341   :  { %973 = vmatprep.subr.bf16.mxu1 %v1867_v26  ;;  %1015 = vmatpush1.bf16.msra.mxu0 %v1868_v27  ;;  %v1946_v26 = vld [vmem:[#allocation5 + $0x190] ss:$8 sps:$4 sm:$0xff]   ;;  %v1951_v27 = vld [vmem:[#allocation5 + $0xa4] ss:$8 sps:$4 sm:$0xff]  }
 0x342   :  { %1016 = vmatprep.subr.bf16.mxu0 %v1876_v29  ;;  %1046 = vmatprep.mubr.bf16.mxu0 %v2063_v0  ;;  %v1949_v29 = vld [vmem:[#allocation5 + $0xa0] ss:$8 sps:$4 sm:$0xff]  }
 0x345   :  { %1017 = vmatpush1.bf16.msra.mxu0 %v1874_v32  ;;  %v1960_v32 = vld [vmem:[#allocation5 + $0x1b4] ss:$8 sps:$4 sm:$0xff]  }
 0x346   :  { %1018 = vmatprep.subr.bf16.mxu0 %v1882_v15  ;;  %v1955_v15 = vld [vmem:[#allocation5 + $0xb0] ss:$8 sps:$4 sm:$0xff]  }
 0x347   :  { %1738 = vmatmul.mubr.msk.bf16.vlgmr.msra.gmra.mrb[8].mxu1 %vm585_vm7, %v825_v33  ;;  %v1958_v33 = vld [vmem:[#allocation5 + $0x1b0] ss:$8 sps:$4 sm:$0xff]  }
 0x348   :  { %974 = vmatpush1.bf16.msra.mxu1 %v1865_v34  ;;  %1005 = vmatprep.mubr.bf16.mxu1 %v2063_v0  ;;  %v1889_v0 = vld [vmem:[#allocation5] ss:$8 sps:$4 sm:$0xff]   ;;  %v1963_v34 = vld [vmem:[#allocation5 + $0xc4] ss:$8 sps:$4 sm:$0xff]  }
 0x349   :  { %975 = vmatprep.subr.bf16.mxu1 %v1873_v35  ;;  %1019 = vmatpush1.bf16.msra.mxu0 %v1880_v36  ;;  %v1966_v35 = vld [vmem:[#allocation5 + $0x1c4] ss:$8 sps:$4 sm:$0xff]   ;;  %v1961_v36 = vld [vmem:[#allocation5 + $0xc0] ss:$8 sps:$4 sm:$0xff]  }
 0x34a   :  { %1020 = vmatprep.subr.bf16.mxu0 %v1888_v37  ;;  %v1964_v37 = vld [vmem:[#allocation5 + $0x1c0] ss:$8 sps:$4 sm:$0xff]  }
 0x34c   :  { %976 = vmatpush1.bf16.msra.mxu1 %v1871_v38  ;;  %v1969_v38 = vld [vmem:[#allocation5 + $0xd4] ss:$8 sps:$4 sm:$0xff]  }
 0x34d   :  { %977 = vmatprep.subr.bf16.mxu1 %v1879_v1  ;;  %1021 = vmatpush1.bf16.msra.mxu0 %v1886_v39  ;;  %v1972_v1 = vld [vmem:[#allocation5 + $0x1d4] ss:$8 sps:$4 sm:$0xff]   ;;  %v1967_v39 = vld [vmem:[#allocation5 + $0xd0] ss:$8 sps:$4 sm:$0xff]  }
 0x34e   :  { %1504 = vmatprep.subr.bf16.mxu0 %v1894_v44  ;;  %v1976_v44 = vld [vmem:[#allocation5 + $0x1e0] ss:$8 sps:$4 sm:$0xff]  }
 0x350   :  { %978 = vmatpush1.bf16.msra.mxu1 %v1877_v40  ;;  %v1970_v40 = vld [vmem:[#allocation5 + $0x1d0] ss:$8 sps:$4 sm:$0xff]  }
 0x351   :  { %979 = vmatprep.subr.bf16.mxu1 %v1885_v41  ;;  %v1975_v41 = vld [vmem:[#allocation5 + $0xe4] ss:$8 sps:$4 sm:$0xff]  }
 0x354   :  { %980 = vmatpush1.bf16.msra.mxu1 %v1883_v42  ;;  %v1978_v42 = vld [vmem:[#allocation5 + $0x1e4] ss:$8 sps:$4 sm:$0xff]  }
 0x355   :  { %1463 = vmatprep.subr.bf16.mxu1 %v1891_v43  ;;  %v1973_v43 = vld [vmem:[#allocation5 + $0xe0] ss:$8 sps:$4 sm:$0xff]  }
 0x41a   :  { %v867_v45 = vpop.f32.mrb[8].mxu1 }
 0x41b   :  { %v873_v47 = vpack.c.bf16 %v867_v45, %v867_v45  ;;  %v1739_v48 = vpop.f32.mrb[9].mxu1  ;;  %v1981_v45 = vld [vmem:[#allocation5 + $0xf4] ss:$8 sps:$4 sm:$0xff]  }
 0x41c   :  { %v870_v51 = vpop.f32.mrb[10].mxu1  ;;  %v310_v48 = vshrl.u32 %v64_v14, 7 }
 0x41d   :  { %v1740_v52 = vpop.f32.mrb[11].mxu1  ;;  %1643 = vmatmul.mubr.msk.bf16.vlgmr.msra.gmra.mrb[0].mxu1 %vm222_vm3, %v873_v47  ;;  %1644 = vmatmul.mubr.msk.bf16.vlgmr.msra.gmra.mrb[4].mxu0 %vm222_vm3, %v873_v47  ;;  %v1982_v47 = vld [vmem:[#allocation5 + $0x1f0] ss:$8 sps:$4 sm:$0xff]  }
 0x41e   :  { %1464 = vmatpush1.bf16.msra.mxu1 %v1889_v0  ;;  %1505 = vmatpush1.bf16.msra.mxu0 %v1892_v46  ;;  %v1984_v0 = vld [vmem:[#allocation5 + $0x1f4] ss:$8 sps:$4 sm:$0xff]   ;;  %v1979_v46 = vld [vmem:[#allocation5 + $0xf0] ss:$8 sps:$4 sm:$0xff]   ;;  %v315_v52 = vsub.s32 1, %v310_v48 }
 0x41f   :  { %1465 = vmatprep.subr.bf16.mxu1 %v1897_v49  ;;  %1506 = vmatprep.subr.bf16.mxu0 %v1900_v50  ;;  %v311_v49 = vsub.s32 0, %v310_v48  ;;  %v319_v50 = vsub.s32 2, %v310_v48  ;;  %v63_v51 = vld [vmem:[%s2236_s6] sm:$0xf] }
 0x422   :  { %1466 = vmatpush1.bf16.msra.mxu1 %v1895_v53  ;;  %1507 = vmatpush1.bf16.msra.mxu0 %v1898_v54  ;;  %v323_v53 = vsub.s32 3, %v310_v48  ;;  %v312_v54 = vrot.slane %v63_v51, %v311_v49 }
 0x423   :  { %1467 = vmatprep.subr.bf16.mxu1 %v1903_v55  ;;  %1508 = vmatprep.subr.bf16.mxu0 %v1906_v56  ;;  %v320_v55 = vrot.slane %v63_v51, %v319_v50  ;;  %v316_v56 = vrot.slane %v63_v51, %v315_v52 }
 0x426   :  { %1468 = vmatpush1.bf16.msra.mxu1 %v1901_v57  ;;  %1509 = vmatpush1.bf16.msra.mxu0 %v1904_v58  ;;  %v324_v57 = vrot.slane %v63_v51, %v323_v53 }
 0x427   :  { %1469 = vmatprep.subr.bf16.mxu1 %v1909_v59  ;;  %1510 = vmatprep.subr.bf16.mxu0 %v1912_v60 }
 0x42a   :  { %1470 = vmatpush1.bf16.msra.mxu1 %v1907_v61  ;;  %1511 = vmatpush1.bf16.msra.mxu0 %v1910_v62 }
 0x42b   :  { %1471 = vmatprep.subr.bf16.mxu1 %v1915_v63  ;;  %1512 = vmatprep.subr.bf16.mxu0 %v1918_v3 }
 0x42e   :  { %1472 = vmatpush1.bf16.msra.mxu1 %v1913_v2  ;;  %1513 = vmatpush1.bf16.msra.mxu0 %v1916_v4 }
 0x42f   :  { %1473 = vmatprep.subr.bf16.mxu1 %v1921_v5  ;;  %1514 = vmatprep.subr.bf16.mxu0 %v1924_v6 }
 0x432   :  { %1474 = vmatpush1.bf16.msra.mxu1 %v1919_v7  ;;  %1515 = vmatpush1.bf16.msra.mxu0 %v1922_v8 }
 0x433   :  { %1475 = vmatprep.subr.bf16.mxu1 %v1927_v9  ;;  %1516 = vmatprep.subr.bf16.mxu0 %v1930_v10 }
 0x436   :  { %1476 = vmatpush1.bf16.msra.mxu1 %v1925_v11  ;;  %1517 = vmatpush1.bf16.msra.mxu0 %v1928_v12 }
 0x437   :  { %1477 = vmatprep.subr.bf16.mxu1 %v1933_v13  ;;  %1518 = vmatprep.subr.bf16.mxu0 %v1936_v16 }
 0x43a   :  { %1478 = vmatpush1.bf16.msra.mxu1 %v1931_v17  ;;  %1519 = vmatpush1.bf16.msra.mxu0 %v1934_v18  ;;  %v1131_v17 = vld [vmem:[%s2238_s8] sm:$0x3]  ;;  %s2029_s8 = scalar_lea.vmem %s1554_s23, 256 }
 0x43b   :  { %1479 = vmatprep.subr.bf16.mxu1 %v1939_v19  ;;  %1520 = vmatprep.subr.bf16.mxu0 %v1942_v20  ;;  %v1136_v18 = vrot.slane %v1131_v17, %v311_v49  ;;  %v1140_v19 = vrot.slane %v1131_v17, %v315_v52  ;;  %p2030_p2 = scmp.ne.s32.totalorder %s1554_s23, %s2029_s8  ;;  %p2035_p4 = scmp.lt.s32.totalorder %s2029_s8, %s2029_s8 }
 0x43d   :  { %p2036_p5 = por %p2035_p4, %p2034_p3 }
 0x43e   :  { %1480 = vmatpush1.bf16.msra.mxu1 %v1937_v21  ;;  %1521 = vmatpush1.bf16.msra.mxu0 %v1940_v22 }
 0x43f   :  { %1481 = vmatprep.subr.bf16.mxu1 %v1945_v23  ;;  %1522 = vmatprep.subr.bf16.mxu0 %v1948_v24  ;;  %p2037_p6 = pnand %p2036_p5, %p2030_p2 }
 0x442   :  { %1482 = vmatpush1.bf16.msra.mxu1 %v1943_v25  ;;  %1523 = vmatpush1.bf16.msra.mxu0 %v1946_v26 }
 0x443   :  { %1483 = vmatprep.subr.bf16.mxu1 %v1951_v27  ;;  %1524 = vmatprep.subr.bf16.mxu0 %v1954_v28 }
 0x446   :  { %1484 = vmatpush1.bf16.msra.mxu1 %v1949_v29  ;;  %1525 = vmatpush1.bf16.msra.mxu0 %v1952_v30 }
 0x447   :  { %1485 = vmatprep.subr.bf16.mxu1 %v1957_v31  ;;  %1526 = vmatprep.subr.bf16.mxu0 %v1960_v32 }
 0x44a   :  { %1486 = vmatpush1.bf16.msra.mxu1 %v1955_v15  ;;  %1527 = vmatpush1.bf16.msra.mxu0 %v1958_v33 }
 0x44b   :  { %1487 = vmatprep.subr.bf16.mxu1 %v1963_v34  ;;  %1528 = vmatprep.subr.bf16.mxu0 %v1966_v35 }
 0x44e   :  { %1488 = vmatpush1.bf16.msra.mxu1 %v1961_v36  ;;  %1529 = vmatpush1.bf16.msra.mxu0 %v1964_v37 }
 0x44f   :  { %1489 = vmatprep.subr.bf16.mxu1 %v1969_v38  ;;  %1530 = vmatprep.subr.bf16.mxu0 %v1972_v1 }
 0x452   :  { %1490 = vmatpush1.bf16.msra.mxu1 %v1967_v39  ;;  %1531 = vmatpush1.bf16.msra.mxu0 %v1970_v40 }
 0x453   :  { %1491 = vmatprep.subr.bf16.mxu1 %v1975_v41  ;;  %1532 = vmatprep.subr.bf16.mxu0 %v1978_v42 }
 0x456   :  { %1492 = vmatpush1.bf16.msra.mxu1 %v1973_v43  ;;  %1533 = vmatpush1.bf16.msra.mxu0 %v1976_v44 }
 0x457   :  { %1493 = vmatprep.subr.bf16.mxu1 %v1981_v45  ;;  %1534 = vmatprep.subr.bf16.mxu0 %v1984_v0 }
 0x45a   :  { %1494 = vmatpush1.bf16.msra.mxu1 %v1979_v46  ;;  %1535 = vmatpush1.bf16.msra.mxu0 %v1982_v47 }
 0x4f0   :  { %v1007_v58 = vpop.f32.mrb[0].mxu1  ;;  %v1048_v59 = vpop.f32.mrb[4].mxu0 }
 0x4f1   :  { %v1741_v60 = vadd.f32 %v1007_v58, %v312_v54  ;;  %v1743_v61 = vadd.f32 %v1048_v59, %v320_v55  ;;  %v1009_v62 = vpop.f32.mrb[1].mxu1  ;;  %v1050_v63 = vpop.f32.mrb[5].mxu0 }
 0x4f2   :  { %v1742_v3 = vadd.f32 %v1009_v62, %v316_v56  ;;  %v1744_v14 = vadd.f32 %v1050_v63, %v324_v57  ;;  %v1011_v2 = vpop.f32.mrb[2].mxu1  ;;  %v1052_v4 = vpop.f32.mrb[6].mxu0 }
 0x4f3   :  { %v1059_v5 = vmax.f32 %v1741_v60, 0.0  ;;  %v1061_v6 = vmax.f32 %v1743_v61, 0.0  ;;  %v1012_v7 = vpop.f32.mrb[3].mxu1  ;;  %v1053_v8 = vpop.f32.mrb[7].mxu0 }
 0x4f4   :  { %v1060_v9 = vmax.f32 %v1742_v3, 0.0  ;;  %v1062_v10 = vmax.f32 %v1744_v14, 0.0 }
 0x4f5   :  { %v1063_v13 = vpack.c.bf16 %v1059_v5, %v1059_v5  ;;  %v1065_v16 = vpack.c.bf16 %v1061_v6, %v1061_v6 }
 0x4f6   :  { %v1064_v11 = vpack.c.bf16 %v1060_v9, %v1060_v9  ;;  %v1066_v12 = vpack.c.bf16 %v1062_v10, %v1062_v10 }
 0x4f8   :  { %1495 = vmatprep.mubr.bf16.mxu1 %v1064_v11  ;;  %1536 = vmatprep.mubr.bf16.mxu0 %v1066_v12 }
 0x4f9   :  { %1496 = vmatmul.mubr.bf16.vlgmr.msra.gmra.mrb[12].mxu1 %v1063_v13  ;;  %1537 = vmatmul.mubr.bf16.vlgmr.msra.gmra.mrb[12].mxu0 %v1065_v16 }
 0x5cc   :  { %v1497_v20 = vpop.f32.mrb[12].mxu1  ;;  %v1538_v21 = vpop.f32.mrb[12].mxu0 }
 0x5cd   :  { %v1498_v22 = vadd.f32 %v1497_v20, %v1136_v18  ;;  %v1499_v23 = vpop.f32.mrb[13].mxu1  ;;  %v1540_v24 = vpop.f32.mrb[13].mxu0 }
 0x5ce   :  { %v1500_v25 = vadd.f32 %v1499_v23, %v1140_v19  ;;  %v1501_v26 = vpop.f32.mrb[14].mxu1  ;;  %v1542_v27 = vpop.f32.mrb[14].mxu0 }
 0x5cf   :  { %v1539_v28 = vadd.f32 %v1538_v21, %v1498_v22  ;;  %v1502_v29 = vpop.f32.mrb[15].mxu1  ;;  %v1543_v30 = vpop.f32.mrb[15].mxu0 }
 0x5d0   :  { %v1541_v31 = vadd.f32 %v1540_v24, %v1500_v25 }
 0x5d1   :  { %1545 = vst [vmem:[#allocation7] sm:$0xff] %v1539_v28 }
 0x5d2   :  { %1546 = vst [vmem:[#allocation7 + $0x8] sm:$0xff] %v1541_v31 }
 0x5d3   :  { %2040 = shalt.err (!%p2037_p6)
}
 0x5d4   :  { %s2041_s26 = scalar_lea.hbm %s2239_s9, 256 }
 0x5d5   :  { %p2042_p7 = scmp.ne.s32.totalorder %s2239_s9, %s2041_s26  ;;  %p2045_p8 = scmp.lt.u32.totalorder %s2041_s26, %s2239_s9 }
 0x5d7   :  { %p2047_p9 = pnand %p2045_p8, %p2042_p7 }
 0x5d9   :  { %2050 = shalt.err (!%p2047_p9)
}
 0x5da   :  { %1556 = dma.vmem_to_hbm [thread:$0]  %s1554_s23, 256, %s2239_s9, [#allocation4]  }
 0x5db   :  { %2055 = dma.done.wait [#allocation4], 256  }
 0x5dc   :  { %2056 = vsyncadd [#allocation4], 4294967040 }
 0x5dd   :  { %1560 = vsyncpa [#allocation3], 1 }
 0x5de   :  { %1561 = vsyncpa [#allocation6], 1 }
 0x5df   :  { %1562 = vsyncpa [#allocation4], 1 }

</bundles_post_ra>
